<compile_context>
chip_gen: v5e
topology: v5e:2x2
jax: 0.10.0
libtpu: 0.0.40
codegen_flags: <defaults>
</compile_context>

<pallas_src>
import functools
import math

import jax
import jax.numpy as jnp
from jax.experimental import pallas as pl
from jax.experimental.pallas import tpu as pltpu

HIDDEN_DIM = 32
TEMPERATURE = 10000.0
_LANE = 128
_MAX_LANE_TILE = 4096   # rows (lanes) per grid step; output tile = 32*4096*4B = 512 KiB


def _round_up(a, b):
    return ((a + b - 1) // b) * b


def _cdiv(a, b):
    return -(-a // b)


def _goal_kernel(xt_ref, consts_ref, w2t_ref, o_ref, *, use_temp):
    # xt_ref:     [3, T]  transposed input: rows on lanes, features (x, y, t) on sublanes
    # consts_ref: [H, 6]  columns: w1[0,:], w1[1,:], b1, b2, inv_freq, phase
    # w2t_ref:    [H, H]  W2^T
    # o_ref:      [H, T]  transposed embedding -> fully lane-dense stores
    xy0 = xt_ref[0:1, :]                              # [1, T]
    xy1 = xt_ref[1:2, :]

    w1c0 = consts_ref[:, 0:1]                         # [H, 1]
    w1c1 = consts_ref[:, 1:2]
    b1c = consts_ref[:, 2:3]
    b2c = consts_ref[:, 3:4]

    # Layer 1 (in_features=2) as two VPU FMAs with [H,1] x [1,T] broadcasting.
    h = jnp.maximum(w1c0 * xy0 + w1c1 * xy1 + b1c, 0.0)          # [H, T]

    # Layer 2 (HxH) on the MXU, f32 accumulation; no final activation / no norm.
    emd = jnp.dot(w2t_ref[...], h, preferred_element_type=jnp.float32) + b2c

    if use_temp:
        t = xt_ref[2:3, :]                            # [1, T]
        inv_freq = consts_ref[:, 4:5]                 # [H, 1]
        phase = consts_ref[:, 5:6]                    # [H, 1], (i%2)*pi/2
        # interleaved sin/cos with a single transcendental: cos(x) = sin(x + pi/2)
        emd = emd + jnp.sin(t * inv_freq + phase)

    o_ref[...] = emd.astype(o_ref.dtype)


def goal_condition_encode(cond_input, params, *, use_temp_posemd=True):
    """Pallas implementation of GoalConditionEncoder.forward."""
    x = cond_input["input"].astype(jnp.float32)       # [B, C, 3]
    B, C, F = x.shape
    N = B * C
    H = params["w1"].shape[1]

    # Lane tiling: big tiles amortize per-grid-step overhead; when affordable use
    # >= 2 parallel steps so v7x can shard across its two TensorCores.
    n_lanes = _round_up(max(N, 1), _LANE)
    steps = _cdiv(n_lanes, _MAX_LANE_TILE)
    if steps == 1 and n_lanes >= 8 * _LANE:
        steps = 2
    tile = _round_up(_cdiv(n_lanes, steps), _LANE)
    Np = tile * steps

    # Transposed input slab [3, Np]: rows on lanes (lane-dense), features on sublanes.
    x_t = x.reshape(N, F).T                           # [3, N] -- tiny XLA transpose
    if Np != N:
        x_t = jnp.pad(x_t, ((0, 0), (0, Np - N)))

    # Fold all per-feature constants into one (H, 6) slab:
    #   col 0-1: W1 rows, col 2: b1, col 3: b2, col 4: inv_freq, col 5: phase
    idx = jnp.arange(H, dtype=jnp.float32)
    dim_t = TEMPERATURE ** (2.0 * jnp.floor(idx / 2.0) / H)
    inv_freq = 1.0 / dim_t                            # [H]
    phase = (jnp.arange(H) % 2).astype(jnp.float32) * (math.pi / 2.0)
    consts = jnp.stack(
        [params["w1"][0], params["w1"][1], params["b1"][0], params["b2"][0],
         inv_freq, phase], axis=1)                    # [H, 6]
    w2t = params["w2"].T                              # [H, H]

    grid = (Np // tile,)
    out_t = pl.pallas_call(
        functools.partial(_goal_kernel, use_temp=use_temp_posemd),
        out_shape=jax.ShapeDtypeStruct((H, Np), jnp.float32),
        grid_spec=pltpu.PrefetchScalarGridSpec(
            num_scalar_prefetch=0,
            grid=grid,
            in_specs=[
                pl.BlockSpec((F, tile), lambda i: (0, i)),   # transposed rows
                pl.BlockSpec((H, 6), lambda i: (0, 0)),      # folded constants
                pl.BlockSpec((H, H), lambda i: (0, 0)),      # W2^T (MXU)
            ],
            out_specs=pl.BlockSpec((H, tile), lambda i: (0, i)),
        ),
        compiler_params=pltpu.CompilerParams(
            dimension_semantics=("parallel",)),
    )(x_t, consts, w2t)

    emd = out_t[:, :N].T.reshape(B, C, H)

    result = {
        "emd": emd,
        "mask": cond_input["mask"],
        "prompt_idx": cond_input["prompt_idx"],
        "prompt_mask": cond_input["prompt_mask"],
    }
    return {"goal": result}


def _reference(cond_input, params, *, use_temp_posemd=True):
    """Pure-JAX reference for correctness checking (mirrors the PyTorch module)."""
    x = cond_input["input"].astype(jnp.float32)
    xy = x[..., :2]
    t = x[..., 2:]
    h = jnp.maximum(xy @ params["w1"] + params["b1"][0], 0.0)
    emd = h @ params["w2"] + params["b2"][0]
    if use_temp_posemd:
        H = params["w1"].shape[1]
        i = jnp.arange(H, dtype=jnp.float32)
        dim_t = TEMPERATURE ** (2.0 * jnp.floor(i / 2.0) / H)
        pos = t / dim_t                                        # [B, C, H]
        four = jnp.stack(
            [jnp.sin(pos[..., 0::2]), jnp.cos(pos[..., 1::2])], axis=-1
        ).reshape(pos.shape)
        emd = emd + four
    return emd


def _init_params(key, hidden_dim):
    """Deterministic init matching PyTorch nn.Linear default (uniform +/- 1/sqrt(fan_in))."""
    k1, k2, k3, k4 = jax.random.split(key, 4)
    bnd1 = 1.0 / jnp.sqrt(2.0)
    bnd2 = 1.0 / jnp.sqrt(float(hidden_dim))
    return {
        "w1": jax.random.uniform(k1, (2, hidden_dim), jnp.float32, -bnd1, bnd1),
        "b1": jax.random.uniform(k2, (1, hidden_dim), jnp.float32, -bnd1, bnd1),
        "w2": jax.random.uniform(k3, (hidden_dim, hidden_dim), jnp.float32, -bnd2, bnd2),
        "b2": jax.random.uniform(k4, (1, hidden_dim), jnp.float32, -bnd2, bnd2),
    }


def _make_inputs(key, B, C):
    kx, kt, km, kpm = jax.random.split(key, 4)
    xy = jax.random.normal(kx, (B, C, 2), jnp.float32) * 10.0
    ts = jax.random.uniform(kt, (B, C, 1), jnp.float32, 0.0, 80.0)
    return {
        "input": jnp.concatenate([xy, ts], axis=-1),                    # [B, C, 3]
        "mask": jax.random.bernoulli(km, 0.8, (B, C)),                  # [B, C]
        "prompt_idx": jnp.arange(B * C, dtype=jnp.int32).reshape(B, C, 1),
        "prompt_mask": jax.random.bernoulli(kpm, 0.8, (B, C)),
    }


if __name__ == "__main__":
    key = jax.random.PRNGKey(0)
    kp, k_small, k_mid, k_big = jax.random.split(key, 4)

    H = HIDDEN_DIM
    params = _init_params(kp, H)

    # small shapes consistent with the module (B=2, C goal conditions) plus one
    # larger shape to exercise the multi-step "parallel" grid path.
    for (B, C), kk in (((2, 8), k_small), ((2, 200), k_mid), ((4, 2048), k_big)):
        cond_input = _make_inputs(kk, B, C)
        out = goal_condition_encode(cond_input, params, use_temp_posemd=True)
        emd = jax.block_until_ready(out["goal"]["emd"])
        assert emd.shape == (B, C, H), emd.shape

        ref = _reference(cond_input, params, use_temp_posemd=True)
        assert jnp.allclose(emd, ref, atol=1e-4, rtol=1e-4), (
            (B, C), float(jnp.max(jnp.abs(emd - ref))))

    print("KERNEL_OK")
</pallas_src>

<mosaic_0001>
module attributes {stable_mosaic.version = 11 : i64} {
  func.func @_goal_kernel(%arg0: i32, %arg1: memref<3x128xf32, #tpu.memory_space<vmem>>, %arg2: memref<32x6xf32, #tpu.memory_space<vmem>>, %arg3: memref<32x32xf32, #tpu.memory_space<vmem>>, %arg4: memref<32x128xf32, #tpu.memory_space<vmem>>) attributes {dimension_semantics = [#tpu.dimension_semantics<parallel>], iteration_bounds = array<i64: 1>, scalar_prefetch = 0 : i64, scratch_operands = 0 : i64, tpu.core_type = #tpu.core_type<tc>, window_params = [{transform_indices = @transform_0, window_bounds = array<i64: 3, 128>}, {pipeline_mode = #tpu.pipeline_mode<synchronous>, transform_indices = @transform_1, window_bounds = array<i64: 32, 6>}, {pipeline_mode = #tpu.pipeline_mode<synchronous>, transform_indices = @transform_2, window_bounds = array<i64: 32, 32>}, {transform_indices = @transform_3, window_bounds = array<i64: 32, 128>}]} {
    %c0 = arith.constant 0 : index
    %c0_0 = arith.constant 0 : index
    %0 = vector.load %arg1[%c0, %c0_0] : memref<3x128xf32, #tpu.memory_space<vmem>>, vector<1x128xf32>
    %c1 = arith.constant 1 : index
    %c0_1 = arith.constant 0 : index
    %1 = vector.load %arg1[%c1, %c0_1] : memref<3x128xf32, #tpu.memory_space<vmem>>, vector<1x128xf32>
    %c0_2 = arith.constant 0 : index
    %c0_3 = arith.constant 0 : index
    %2 = vector.load %arg2[%c0_2, %c0_3] : memref<32x6xf32, #tpu.memory_space<vmem>>, vector<32x1xf32>
    %c0_4 = arith.constant 0 : index
    %c1_5 = arith.constant 1 : index
    %3 = vector.load %arg2[%c0_4, %c1_5] : memref<32x6xf32, #tpu.memory_space<vmem>>, vector<32x1xf32>
    %c0_6 = arith.constant 0 : index
    %c2 = arith.constant 2 : index
    %4 = vector.load %arg2[%c0_6, %c2] : memref<32x6xf32, #tpu.memory_space<vmem>>, vector<32x1xf32>
    %c0_7 = arith.constant 0 : index
    %c3 = arith.constant 3 : index
    %5 = vector.load %arg2[%c0_7, %c3] : memref<32x6xf32, #tpu.memory_space<vmem>>, vector<32x1xf32>
    %6 = vector.broadcast %2 : vector<32x1xf32> to vector<32x128xf32>
    %7 = vector.broadcast %0 : vector<1x128xf32> to vector<32x128xf32>
    %8 = arith.mulf %6, %7 : vector<32x128xf32>
    %9 = vector.broadcast %3 : vector<32x1xf32> to vector<32x128xf32>
    %10 = vector.broadcast %1 : vector<1x128xf32> to vector<32x128xf32>
    %11 = arith.mulf %9, %10 : vector<32x128xf32>
    %12 = arith.addf %8, %11 : vector<32x128xf32>
    %13 = vector.broadcast %4 : vector<32x1xf32> to vector<32x128xf32>
    %14 = arith.addf %12, %13 : vector<32x128xf32>
    %cst = arith.constant 0.000000e+00 : f32
    %15 = vector.broadcast %cst : f32 to vector<32x128xf32>
    %16 = arith.maximumf %14, %15 : vector<32x128xf32>
    %c0_8 = arith.constant 0 : index
    %c0_9 = arith.constant 0 : index
    %17 = vector.load %arg3[%c0_8, %c0_9] : memref<32x32xf32, #tpu.memory_space<vmem>>, vector<32x32xf32>
    %cst_10 = arith.constant dense<0.000000e+00> : vector<32x128xf32>
    %18 = tpu.matmul %17, %16, %cst_10 {dimension_numbers = #tpu.dot_dimension_numbers<[1], [0], [0], [1], [0, 0, 1, 1], [], []>} : vector<32x32xf32>, vector<32x128xf32>, vector<32x128xf32> -> vector<32x128xf32>
    %19 = vector.broadcast %5 : vector<32x1xf32> to vector<32x128xf32>
    %20 = arith.addf %18, %19 : vector<32x128xf32>
    %c2_11 = arith.constant 2 : index
    %c0_12 = arith.constant 0 : index
    %21 = vector.load %arg1[%c2_11, %c0_12] : memref<3x128xf32, #tpu.memory_space<vmem>>, vector<1x128xf32>
    %c0_13 = arith.constant 0 : index
    %c4 = arith.constant 4 : index
    %22 = vector.load %arg2[%c0_13, %c4] : memref<32x6xf32, #tpu.memory_space<vmem>>, vector<32x1xf32>
    %c0_14 = arith.constant 0 : index
    %c5 = arith.constant 5 : index
    %23 = vector.load %arg2[%c0_14, %c5] : memref<32x6xf32, #tpu.memory_space<vmem>>, vector<32x1xf32>
    %24 = vector.broadcast %21 : vector<1x128xf32> to vector<32x128xf32>
    %25 = vector.broadcast %22 : vector<32x1xf32> to vector<32x128xf32>
    %26 = arith.mulf %24, %25 : vector<32x128xf32>
    %27 = vector.broadcast %23 : vector<32x1xf32> to vector<32x128xf32>
    %28 = arith.addf %26, %27 : vector<32x128xf32>
    %29 = math.sin %28 : vector<32x128xf32>
    %30 = arith.addf %20, %29 : vector<32x128xf32>
    %c0_15 = arith.constant 0 : index
    %c0_16 = arith.constant 0 : index
    %31 = vector.load %arg4[%c0_15, %c0_16] : memref<32x128xf32, #tpu.memory_space<vmem>>, vector<32x128xf32>
    tpu.vector_store %arg4[%c0_15, %c0_16], %30 {strides = array<i32>} : memref<32x128xf32, #tpu.memory_space<vmem>>, vector<32x128xf32>,
    return
  }
  func.func @transform_0(%arg0: i32) -> (i32, i32) {
    %c0_i32 = arith.constant 0 : i32
    %c0_i32_0 = arith.constant 0 : i32
    return %c0_i32, %arg0 : i32, i32
  }
  func.func @transform_1(%arg0: i32) -> (i32, i32) {
    %c0_i32 = arith.constant 0 : i32
    %c0_i32_0 = arith.constant 0 : i32
    %c0_i32_1 = arith.constant 0 : i32
    return %c0_i32, %c0_i32_0 : i32, i32
  }
  func.func @transform_2(%arg0: i32) -> (i32, i32) {
    %c0_i32 = arith.constant 0 : i32
    %c0_i32_0 = arith.constant 0 : i32
    %c0_i32_1 = arith.constant 0 : i32
    return %c0_i32, %c0_i32_0 : i32, i32
  }
  func.func @transform_3(%arg0: i32) -> (i32, i32) {
    %c0_i32 = arith.constant 0 : i32
    %c0_i32_0 = arith.constant 0 : i32
    return %c0_i32, %arg0 : i32, i32
  }
}

</mosaic_0001>

<bundles_post_ra>
// kernel: tpu_custom_call.1
= control target key start
LH: loop header
LB: loop body
LE: loop exit
PB: predicated region body
PF: predicated region fallthrough
CT: control target
= control target key end

     0   :  { %v936_v2 = vmov 0   ;;  %s1610_s0 = inlined_call_operand.vmem [shape: f32[3,128], index: 0, kind: input, shape index: {}]   ;;  %s1611_s1 = inlined_call_operand.vmem [shape: f32[32,6], index: 1, kind: input, shape index: {}]   ;;  %s1612_s2 = inlined_call_operand.vmem [shape: f32[32,32], index: 2, kind: input, shape index: {}]   ;;  %s1613_s3 = inlined_call_operand.hbm [shape: f32[32,128], index: 3, kind: output, shape index: {}]  }
   0x1   :  { %v974_v0 = vld [vmem:[%s1611_s1 + $0x18] sm:$0xff]  ;;  %v979_v1 = vld [vmem:[%s1611_s1 + $0x10] sm:$0xff]  ;;  %890 = vset.pattern.permute.xlu1 %v936_v2  ;;  %888 = vset.pattern.permute.xlu0 %v936_v2  ;;  %v986_v3 = vld [vmem:[%s1611_s1 + $0x8] sm:$0xff] }
   0x2   :  { %38 = vperm.xlu0 %888, %v974_v0   ;;  %33 = vperm.xlu1 %890, %v979_v1  }
   0x3   :  { %8 = vsyncpa [#allocation3], 0  ;;  %892 = vset.pattern.permute.xlu2 %v936_v2  ;;  %v937_v4 = vmov 1   ;;  %v998_v5 = vld [vmem:[%s1611_s1] sm:$0xff]  ;;  %v938_v6 = vmov 2   ;;  %v939_v7 = vmov 4  }
   0x4   :  { %28 = vperm.xlu2 %892, %v986_v3   ;;  %v940_v8 = vmov 5   ;;  %v908_v16 = vld [vmem:[%s1610_s0 + $0x1] ss:$0 sm:$0xff]  ;;  %v907_v17 = vld [vmem:[%s1610_s0] ss:$0 sm:$0xff]  ;;  %v941_v37 = vmov 3  }
   0x5   :  { %v1032_v44 = vld [vmem:[%s1610_s0 + $0x2] ss:$0 sm:$0xff]  ;;  %vm115_vm0 = vcmask 261120   ;;  %v96_v48 = vld [vmem:[%s1612_s2 + $0x8] sm:$0xff]  ;;  %v97_v50 = vld [vmem:[%s1612_s2 + $0x10] sm:$0xff]  ;;  %s833_s8 = sshll.u32 %s1613_s3, 4  ;;  %s834_s8 = int_to_ptr.hbm [resolvable:$true] %s833_s8 }
   0x6   :  { %v95_v47 = vld [vmem:[%s1612_s2] sm:$0xff]  ;;  %v98_v51 = vld [vmem:[%s1612_s2 + $0x18] sm:$0xff]  ;;  %s948_s2 = smov [#allocation2]   ;;  %s949_s9 = smov 128  }
   0x7   :  { %s831_s5 = sshll.u32 %s948_s2, 4  ;;  %s950_s10 = smov 8   ;;  %s832_s5 = int_to_ptr.vmem [resolvable:$true] %s831_s5 }
   0xa   :  { %889 = vset.pattern.permute.xlu0 %v937_v4  ;;  %891 = vset.pattern.permute.xlu1 %v937_v4 }
   0xb   :  { %59 = vperm.xlu0 %889, %v974_v0   ;;  %55 = vperm.xlu1 %891, %v979_v1  }
   0xc   :  { %893 = vset.pattern.permute.xlu2 %v937_v4 }
   0xd   :  { %51 = vperm.xlu2 %893, %v986_v3  }
  0x13   :  { %894 = vset.pattern.permute.xlu1 %v938_v6  ;;  %47 = vperm.xlu0 %889, %v998_v5  }
  0x14   :  { %84 = vperm.xlu1 %894, %v974_v0  }
  0x15   :  { %895 = vset.pattern.permute.xlu2 %v936_v2 }
  0x16   :  { %23 = vperm.xlu2 %895, %v998_v5  }
  0x1b   :  { %897 = vset.pattern.permute.xlu0 %v938_v6 }
  0x1c   :  { %80 = vperm.xlu1 %894, %v979_v1   ;;  %72 = vperm.xlu0 %897, %v998_v5  }
  0x1e   :  { %896 = vset.pattern.permute.xlu2 %v938_v6  ;;  %v942_v6 = vmov 920167782  }
  0x1f   :  { %76 = vperm.xlu2 %896, %v986_v3  }
  0x24   :  { %898 = vset.pattern.permute.xlu1 %v939_v7  ;;  %900 = vset.pattern.permute.xlu0 %v940_v8 }
  0x25   :  { %160 = vperm.xlu1 %898, %v998_v5   ;;  %180 = vperm.xlu0 %900, %v998_v5  }
  0x27   :  { %899 = vset.pattern.permute.xlu2 %v939_v7 }
  0x28   :  { %164 = vperm.xlu2 %899, %v986_v3  }
  0x2d   :  { %168 = vperm.xlu1 %898, %v979_v1   ;;  %904 = vset.pattern.permute.xlu0 %v941_v37 }
  0x2e   :  { %104 = vperm.xlu0 %904, %v986_v3  }
  0x30   :  { %172 = vperm.xlu2 %899, %v974_v0  }
  0x35   :  { %901 = vset.pattern.permute.xlu1 %v940_v8 }
  0x36   :  { %184 = vperm.xlu1 %901, %v986_v3   ;;  %906 = vset.pattern.permute.xlu0 %v940_v8 }
  0x38   :  { %902 = vset.pattern.permute.xlu2 %v940_v8 }
  0x39   :  { %188 = vperm.xlu2 %902, %v979_v1  }
  0x3e   :  { %192 = vperm.xlu1 %901, %v974_v0  }
  0x41   :  { %903 = vset.pattern.permute.xlu2 %v941_v37 }
  0x42   :  { %100 = vperm.xlu2 %903, %v998_v5  }
  0x46   :  { %905 = vset.pattern.permute.xlu1 %v941_v37 }
  0x47   :  { %108 = vperm.xlu1 %905, %v979_v1  }
  0x4a   :  { %112 = vperm.xlu2 %903, %v974_v0  }
  0x5e   :  { %v29_v9 = vpop.permute.xlu2 %28 }
  0x5f   :  { %v43_v23 = vmul.f32 %v907_v17, %v29_v9  ;;  %v943_v9 = vmov 2475754826  }
  0x67   :  { %v52_v10 = vpop.permute.xlu2 %51 }
  0x68   :  { %v64_v24 = vmul.f32 %v908_v16, %v52_v10 }
  0x6a   :  { %v68_v29 = vadd.f32 %v64_v24, %v43_v23  ;;  %v1618_v23 = vmov 683565275  }
  0x70   :  { %v24_v13 = vpop.permute.xlu2 %23 }
  0x71   :  { %v42_v30 = vmul.f32 %v907_v17, %v24_v13  ;;  %v945_v13 = vmov 2102212464  }
  0x74   :  { %v34_v11 = vpop.permute.xlu1 %33  ;;  %v39_v12 = vpop.permute.xlu0 %38 }
  0x75   :  { %v45_v19 = vmul.f32 %v907_v17, %v39_v12  ;;  %v44_v31 = vmul.f32 %v907_v17, %v34_v11  ;;  %v944_v11 = vmov 2131351028  }
  0x79   :  { %v77_v20 = vpop.permute.xlu2 %76 }
  0x7a   :  { %v88_v38 = vadd.f32 %v77_v20, %v68_v29 }
  0x7c   :  { %v92_v43 = vmax.f32 %v88_v38, 0.0 }
  0x7d   :  { %v60_v14 = vpop.permute.xlu0 %59  ;;  %v56_v15 = vpop.permute.xlu1 %55 }
  0x7e   :  { %v66_v18 = vmul.f32 %v908_v16, %v60_v14  ;;  %v65_v27 = vmul.f32 %v908_v16, %v56_v15 }
  0x80   :  { %v70_v22 = vadd.f32 %v66_v18, %v45_v19  ;;  %v69_v34 = vadd.f32 %v65_v27, %v44_v31  ;;  %v946_v18 = vmov 1326507024  }
  0x82   :  { %v1024_v33 = vpop.permute.xlu2 %164 }
  0x85   :  { %v48_v21 = vpop.permute.xlu0 %47 }
  0x86   :  { %v85_v25 = vpop.permute.xlu1 %84  ;;  %v63_v32 = vmul.f32 %v908_v16, %v48_v21 }
  0x87   :  { %v90_v26 = vadd.f32 %v85_v25, %v70_v22 }
  0x88   :  { %v67_v40 = vadd.f32 %v63_v32, %v42_v30  ;;  %v176_v32 = vmul.f32 %v1032_v44, %v1024_v33 }
  0x89   :  { %v94_v28 = vmax.f32 %v90_v26, 0.0 }
  0x8a   :  { %v1034_v46 = vpop.permute.xlu2 %172 }
  0x8b   :  { %140 = vmatpush.msra.mxu0 %v94_v28  ;;  %861 = vmatpush.msra.mxu1 %v94_v28 }
  0x8c   :  { %862 = vmatpush.msra.mxu2 %v94_v28  ;;  %863 = vmatpush.msra.mxu3 %v94_v28 }
  0x8e   :  { %v81_v35 = vpop.permute.xlu1 %80  ;;  %v73_v36 = vpop.permute.xlu0 %72 }
  0x8f   :  { %v89_v39 = vadd.f32 %v81_v35, %v69_v34  ;;  %v87_v42 = vadd.f32 %v73_v36, %v67_v40 }
  0x91   :  { %v93_v41 = vmax.f32 %v89_v39, 0.0  ;;  %v91_v45 = vmax.f32 %v87_v42, 0.0 }
  0x93   :  { %141 = vmatpush.msra.mxu0 %v93_v41  ;;  %864 = vmatpush.msra.mxu1 %v93_v41  ;;  %v189_v58 = vpop.permute.xlu2 %188 }
  0x94   :  { %865 = vmatpush.msra.mxu2 %v93_v41  ;;  %866 = vmatpush.msra.mxu3 %v93_v41 }
  0x95   :  { %142 = vmatpush.msra.mxu0 %v92_v43  ;;  %867 = vmatpush.msra.mxu1 %v92_v43 }
  0x96   :  { %868 = vmatpush.msra.mxu2 %v92_v43  ;;  %869 = vmatpush.msra.mxu3 %v92_v43 }
  0x97   :  { %v161_v49 = vpop.permute.xlu1 %160  ;;  %143 = vmatpush.msra.mxu0 %v91_v45  ;;  %870 = vmatpush.msra.mxu1 %v91_v45  ;;  %v181_v52 = vpop.permute.xlu0 %180 }
  0x98   :  { %v175_v53 = vmul.f32 %v1032_v44, %v161_v49  ;;  %871 = vmatpush.msra.mxu2 %v91_v45  ;;  %872 = vmatpush.msra.mxu3 %v91_v45 }
  0x99   :  { %845 = vmatmul.msk.f32.vlgmr.msra.gmra.mxu0 %vm115_vm0, %v95_v47  ;;  %846 = vmatmul.msk.f32.vlgmr.msra.gmra.mxu1 %vm115_vm0, %v96_v48 }
  0x9a   :  { %847 = vmatmul.msk.f32.vlgmr.msra.gmra.mxu2 %vm115_vm0, %v97_v50  ;;  %848 = vmatmul.msk.f32.vlgmr.msra.gmra.mxu3 %vm115_vm0, %v98_v51  ;;  %v1049_v54 = vadd.f32 %v181_v52, %v175_v53 }
  0x9c   :  { %v202_v55 = vand.u32 2139095040, %v1049_v54  ;;  %v1617_v8 = vand.u32 2147483647, %v1049_v54 }
  0x9e   :  { %v203_v56 = vshrl.u32 %v202_v55, 23  ;;  %v206_v22 = vand.u32 8388607, %v1617_v8 }
  0x9f   :  { %v169_v57 = vpop.permute.xlu1 %168 }
  0xa0   :  { %v849_v59 = vadd.s32 4294967169, %v203_v56  ;;  %v177_v60 = vmul.f32 %v1032_v44, %v169_v57  ;;  %v207_v34 = vor.u32 8388608, %v206_v22 }
  0xa2   :  { %v209_v61 = vadd.s32 1, %v849_v59  ;;  %v1055_v62 = vadd.f32 %v189_v58, %v177_v60  ;;  %v1097_v48 = vshll.u32 %v207_v34, 8 }
  0xa4   :  { %vm210_vm1 = vcmp.gt.s32.totalorder %v209_v61, 0  ;;  %v512_v1 = vand.u32 2139095040, %v1055_v62  ;;  %v1615_v25 = vand.u32 2147483647, %v1055_v62 }
  0xa5   :  { %v211_v63 = vsel %vm210_vm1, %v209_v61, 0 }
  0xa6   :  { %v213_v3 = vand.u32 31, %v211_v63  ;;  %v513_v0 = vshrl.u32 %v512_v1, 23  ;;  %v1058_v5 = vshrl.u32 %v211_v63, 5  ;;  %v516_v35 = vand.u32 8388607, %v1615_v25 }
  0xa8   :  { %v214_v4 = vsub.s32 32, %v213_v3  ;;  %v228_v7 = vshll.u32 %v942_v6, %v213_v3  ;;  %v219_v10 = vshll.u32 %v943_v9, %v213_v3  ;;  %v222_v12 = vshll.u32 %v944_v11, %v213_v3  ;;  %v185_v36 = vpop.permute.xlu1 %184 }
  0xa9   :  { %v225_v14 = vshll.u32 %v945_v13, %v213_v3  ;;  %v855_v20 = vadd.s32 4294967169, %v513_v0  ;;  %vm234_vm2 = vcmp.lt.s32.totalorder %v1058_v5, 4  ;;  %v216_v24 = vshll.u32 %v1618_v23, %v213_v3 }
  0xaa   :  { %v220_v15 = vshrl.u32 %v944_v11, %v214_v4  ;;  %v223_v16 = vshrl.u32 %v945_v13, %v214_v4  ;;  %v226_v17 = vshrl.u32 %v942_v6, %v214_v4  ;;  %v229_v19 = vshrl.u32 %v946_v18, %v214_v4 }
  0xab   :  { %v519_v29 = vadd.s32 1, %v855_v20  ;;  %v217_v30 = vshrl.u32 %v943_v9, %v214_v4  ;;  %vm231_vm3 = vcmp.lt.s32.totalorder %v1058_v5, 1  ;;  %vm233_vm4 = vcmp.lt.s32.totalorder %v1058_v5, 3 }
  0xac   :  { %v230_v21 = vor.u32 %v229_v19, %v228_v7  ;;  %v221_v26 = vor.u32 %v220_v15, %v219_v10  ;;  %v224_v27 = vor.u32 %v223_v16, %v222_v12  ;;  %v227_v28 = vor.u32 %v226_v17, %v225_v14 }
  0xad   :  { %vm520_vm5 = vcmp.gt.s32.totalorder %v519_v29, 0  ;;  %vm232_vm6 = vcmp.lt.s32.totalorder %v1058_v5, 2  ;;  %v215_v40 = vshrl.u32 %v1618_v23, %v214_v4  ;;  %v218_v41 = vor.u32 %v217_v30, %v216_v24 }
  0xae   :  { %v244_v31 = vsel %vm234_vm2, %v230_v21, 1326507024  ;;  %v243_v37 = vsel %vm231_vm3, %v221_v26, %v224_v27  ;;  %v521_v39 = vsel %vm520_vm5, %v519_v29, 0  ;;  %v236_v33 = vsel %vm234_vm2, %v224_v27, 2102212464 }
  0xaf   :  { %v245_v38 = vsel %vm233_vm4, %v227_v28, %v244_v31  ;;  %v1091_v42 = vadd.f32 %v185_v36, %v176_v32  ;;  %v240_v43 = vsel %vm234_vm2, %v227_v28, 920167782  ;;  %v523_v47 = vand.u32 31, %v521_v39 }
  0xb0   :  { %v246_v45 = vsel %vm232_vm6, %v243_v37, %v245_v38  ;;  %v517_v49 = vor.u32 8388608, %v516_v35  ;;  %v235_v50 = vsel %vm231_vm3, %v215_v40, %v218_v41  ;;  %v237_v51 = vsel %vm233_vm4, %v221_v26, %v236_v33 }
  0xb1   :  { %v239_v52 = vsel %vm231_vm3, %v218_v41, %v221_v26  ;;  %v1105_v53 = vsub.s32 32, %v523_v47  ;;  %v241_v55 = vsel %vm233_vm4, %v224_v27, %v240_v43  ;;  %v251_v56 = vshrl.u32 %v246_v45, 16  ;;  %v193_v26 = vpop.permute.xlu1 %192 }
  0xb2   :  { %v1109_v57 = vshrl.u32 %v521_v39, 5  ;;  %v357_v58 = vand.u32 2139095040, %v1091_v42  ;;  %v529_v59 = vshll.u32 %v943_v9, %v523_v47  ;;  %v532_v61 = vshll.u32 %v944_v11, %v523_v47 }
  0xb3   :  { %v530_v60 = vshrl.u32 %v944_v11, %v1105_v53  ;;  %v535_v63 = vshll.u32 %v945_v13, %v523_v47  ;;  %v533_v1 = vshrl.u32 %v945_v13, %v1105_v53  ;;  %v536_v3 = vshrl.u32 %v942_v6, %v1105_v53 }
  0xb4   :  { %v538_v4 = vshll.u32 %v942_v6, %v523_v47  ;;  %v539_v0 = vshrl.u32 %v946_v18, %v1105_v53  ;;  %v248_v7 = vand.u32 65535, %v1097_v48  ;;  %v249_v10 = vshrl.u32 %v1097_v48, 16 }
  0xb5   :  { %v178_v12 = vmul.f32 %v1032_v44, %v1034_v46  ;;  %v1130_v14 = vsel %vm232_vm6, %v235_v50, %v237_v51  ;;  %v242_v15 = vsel %vm232_vm6, %v239_v52, %v241_v55  ;;  %v1134_v17 = vshll.u32 %v517_v49, 8 }
  0xb6   :  { %v540_v16 = vor.u32 %v539_v0, %v538_v4  ;;  %v1136_v19 = vmul.u32 %v251_v56, %v248_v7  ;;  %v526_v20 = vshll.u32 %v1618_v23, %v523_v47  ;;  %v527_v21 = vshrl.u32 %v943_v9, %v1105_v53 }
  0xb7   :  { %v358_v22 = vshrl.u32 %v357_v58, 23  ;;  %v531_v24 = vor.u32 %v530_v60, %v529_v59  ;;  %v534_v44 = vor.u32 %v533_v1, %v532_v61  ;;  %v537_v46 = vor.u32 %v536_v3, %v535_v63 }
  0xb8   :  { %vm544_vm7 = vcmp.lt.s32.totalorder %v1109_v57, 4  ;;  %v250_v27 = vand.u32 65535, %v246_v45  ;;  %v292_v5 = vmul.u32 %v1097_v48, %v1130_v14  ;;  %v272_v30 = vand.u32 65535, %v242_v15 }
  0xb9   :  { %v554_v28 = vsel %vm544_vm7, %v540_v16, 1326507024  ;;  %v852_v29 = vadd.s32 4294967169, %v358_v22  ;;  %v273_v31 = vshrl.u32 %v242_v15, 16  ;;  %v1147_v32 = vand.u32 65535, %v1134_v17 }
  0xba   :  { %v1150_v34 = vshrl.u32 %v1134_v17, 16  ;;  %v256_v35 = vshll.u32 %v1136_v19, 16  ;;  %vm541_vm8 = vcmp.lt.s32.totalorder %v1109_v57, 1  ;;  %vm543_vm9 = vcmp.lt.s32.totalorder %v1109_v57, 3 }
  0xbb   :  { %v1155_v36 = vadd.f32 %v193_v26, %v178_v12  ;;  %v528_v37 = vor.u32 %v527_v21, %v526_v20  ;;  %v553_v38 = vsel %vm541_vm8, %v531_v24, %v534_v44  ;;  %v555_v39 = vsel %vm543_vm9, %v537_v46, %v554_v28 }
  0xbc   :  { %v364_v40 = vadd.s32 1, %v852_v29  ;;  %v1161_v41 = vmul.u32 %v250_v27, %v248_v7  ;;  %v1163_v33 = vmul.u32 %v250_v27, %v249_v10  ;;  %v550_v43 = vsel %vm544_vm7, %v537_v46, 920167782 }
  0xbd   :  { %v1616_v45 = vand.u32 2147483647, %v1091_v42  ;;  %v255_v47 = vmul.u32 %v251_v56, %v249_v10  ;;  %v1168_v49 = vmul.u32 %v272_v30, %v248_v7  ;;  %v1170_v50 = vmul.u32 %v273_v31, %v248_v7 }
  0xbe   :  { %vm542_vm10 = vcmp.lt.s32.totalorder %v1109_v57, 2  ;;  %vm260_vm11 = vc.u32 %v1161_v41, %v256_v35  ;;  %v1176_v51 = vmul.u32 %v272_v30, %v249_v10  ;;  %vm365_vm12 = vcmp.gt.s32.totalorder %v364_v40, 0 }
  0xbf   :  { %v1180_v52 = vsel %vm542_vm10, %v553_v38, %v555_v39  ;;  %v549_v55 = vsel %vm541_vm8, %v528_v37, %v531_v24  ;;  %v551_v56 = vsel %vm543_vm9, %v534_v44, %v550_v43  ;;  %v366_v58 = vsel %vm365_vm12, %v364_v40, 0 }
  0xc0   :  { %v667_v59 = vand.u32 2139095040, %v1155_v36  ;;  %v258_v60 = vshll.u32 %v1163_v33, 16  ;;  %v1188_v61 = vmul.u32 %v273_v31, %v249_v10  ;;  %v525_v63 = vshrl.u32 %v1618_v23, %v1105_v53 }
  0xc1   :  { %v368_v1 = vand.u32 31, %v366_v58  ;;  %v261_v3 = vsel %vm260_vm11, 1, %v936_v2  ;;  %v546_v4 = vsel %vm544_vm7, %v534_v44, 2102212464  ;;  %v561_v0 = vshrl.u32 %v1180_v52, 16 }
  0xc2   :  { %v361_v7 = vand.u32 8388607, %v1616_v45  ;;  %v552_v12 = vsel %vm542_vm10, %v549_v55, %v551_v56  ;;  %v1200_v15 = vshrl.u32 %v366_v58, 5  ;;  %v668_v22 = vshrl.u32 %v667_v59, 23 }
  0xc3   :  { %v369_v10 = vsub.s32 32, %v368_v1  ;;  %v374_v16 = vshll.u32 %v943_v9, %v368_v1  ;;  %v377_v53 = vshll.u32 %v944_v11, %v368_v1  ;;  %v380_v20 = vshll.u32 %v945_v13, %v368_v1 }
  0xc4   :  { %v383_v21 = vshll.u32 %v942_v6, %v368_v1  ;;  %v545_v44 = vsel %vm541_vm8, %v525_v63, %v528_v37  ;;  %v547_v46 = vsel %vm543_vm9, %v531_v24, %v546_v4  ;;  %v1213_v28 = vmul.u32 %v561_v0, %v1147_v32 }
  0xc5   :  { %v375_v26 = vshrl.u32 %v944_v11, %v369_v10  ;;  %v378_v27 = vshrl.u32 %v945_v13, %v369_v10  ;;  %v362_v29 = vor.u32 8388608, %v361_v7  ;;  %v381_v30 = vshrl.u32 %v942_v6, %v369_v10 }
  0xc6   :  { %v384_v31 = vshrl.u32 %v946_v18, %v369_v10  ;;  %v560_v38 = vand.u32 65535, %v1180_v52  ;;  %v582_v39 = vand.u32 65535, %v552_v12  ;;  %vm386_vm13 = vcmp.lt.s32.totalorder %v1200_v15, 1 }
  0xc7   :  { %v376_v40 = vor.u32 %v375_v26, %v374_v16  ;;  %v379_v37 = vor.u32 %v378_v27, %v377_v53  ;;  %v382_v43 = vor.u32 %v381_v30, %v380_v20  ;;  %v858_v24 = vadd.s32 4294967169, %v668_v22 }
  0xc8   :  { %v385_v55 = vor.u32 %v384_v31, %v383_v21  ;;  %v371_v56 = vshll.u32 %v1618_v23, %v368_v1  ;;  %v372_v58 = vshrl.u32 %v943_v9, %v369_v10  ;;  %vm389_vm14 = vcmp.lt.s32.totalorder %v1200_v15, 4 }
  0xc9   :  { %v398_v59 = vsel %vm386_vm13, %v376_v40, %v379_v37  ;;  %v566_v63 = vshll.u32 %v1213_v28, 16  ;;  %vm388_vm15 = vcmp.lt.s32.totalorder %v1200_v15, 3  ;;  %v674_v4 = vadd.s32 1, %v858_v24 }
  0xca   :  { %v399_v52 = vsel %vm389_vm14, %v385_v55, 1326507024  ;;  %v583_v7 = vshrl.u32 %v552_v12, 16  ;;  %vm387_vm0 = vcmp.lt.s32.totalorder %v1200_v15, 2  ;;  %v1614_v16 = vand.u32 2147483647, %v1155_v36 }
  0xcb   :  { %v400_v1 = vsel %vm388_vm15, %v382_v43, %v399_v52  ;;  %v562_v53 = vmul.u32 %v560_v38, %v1147_v32  ;;  %v1237_v21 = vshll.u32 %v362_v29, 8  ;;  %vm675_vm1 = vcmp.gt.s32.totalorder %v674_v4, 0 }
  0xcc   :  { %v1235_v20 = vsel %vm387_vm0, %v398_v59, %v400_v1  ;;  %v262_v12 = vadd.s32 %v256_v35, %v1161_v41  ;;  %v1242_v22 = vadd.s32 %v261_v3, %v255_v47  ;;  %v1246_v26 = vsel %vm542_vm10, %v545_v44, %v547_v46 }
  0xcd   :  { %v373_v27 = vor.u32 %v372_v58, %v371_v56  ;;  %vm570_vm2 = vc.u32 %v562_v53, %v566_v63  ;;  %v370_v30 = vshrl.u32 %v1618_v23, %v369_v10  ;;  %v395_v31 = vsel %vm389_vm14, %v382_v43, 920167782 }
  0xce   :  { %v676_v29 = vsel %vm675_vm1, %v674_v4, 0  ;;  %v1252_v55 = vmul.u32 %v560_v38, %v1150_v34  ;;  %v391_v35 = vsel %vm389_vm14, %v379_v37, 2102212464  ;;  %v406_v41 = vshrl.u32 %v1235_v20, 16 }
  0xcf   :  { %v671_v57 = vand.u32 8388607, %v1614_v16  ;;  %v565_v47 = vmul.u32 %v561_v0, %v1150_v34  ;;  %v1261_v3 = vmul.u32 %v582_v39, %v1147_v32  ;;  %v1264_v10 = vmul.u32 %v583_v7, %v1147_v32 }
  0xd0   :  { %v403_v44 = vand.u32 65535, %v1237_v21  ;;  %v571_v46 = vsel %vm570_vm2, 1, %v936_v2  ;;  %v394_v38 = vsel %vm386_vm13, %v373_v27, %v376_v40  ;;  %v396_v43 = vsel %vm388_vm15, %v379_v37, %v395_v31 }
  0xd1   :  { %v678_v24 = vand.u32 31, %v676_v29  ;;  %v1273_v56 = vmul.u32 %v582_v39, %v1150_v34  ;;  %v1276_v0 = vmul.u32 %v583_v7, %v1150_v34  ;;  %v390_v32 = vsel %vm386_vm13, %v370_v30, %v373_v27 }
  0xd2   :  { %v392_v58 = vsel %vm388_vm15, %v376_v40, %v391_v35  ;;  %v568_v59 = vshll.u32 %v1252_v55, 16  ;;  %v1283_v52 = vmul.u32 %v406_v41, %v403_v44  ;;  %v672_v4 = vor.u32 8388608, %v671_v57 }
  0xd3   :  { %v1285_v1 = vsub.s32 32, %v678_v24  ;;  %v1287_v37 = vadd.s32 %v566_v63, %v562_v53  ;;  %v1289_v39 = vadd.s32 %v571_v46, %v565_v47  ;;  %v397_v34 = vsel %vm387_vm0, %v394_v38, %v396_v43 }
  0xd4   :  { %v404_v7 = vshrl.u32 %v1237_v21, 16  ;;  %v1296_v27 = vsel %vm387_vm0, %v390_v32, %v392_v58  ;;  %v405_v40 = vand.u32 65535, %v1235_v20  ;;  %v1299_v30 = vshrl.u32 %v676_v29, 5 }
  0xd5   :  { %v685_v31 = vshrl.u32 %v944_v11, %v1285_v1  ;;  %v688_v63 = vshrl.u32 %v945_v13, %v1285_v1  ;;  %v691_v53 = vshrl.u32 %v942_v6, %v1285_v1  ;;  %v693_v35 = vshll.u32 %v942_v6, %v678_v24 }
  0xd6   :  { %v694_v15 = vshrl.u32 %v946_v18, %v1285_v1  ;;  %v411_v57 = vshll.u32 %v1283_v52, 16  ;;  %v427_v47 = vand.u32 65535, %v397_v34  ;;  %v690_v20 = vshll.u32 %v945_v13, %v678_v24 }
  0xd7   :  { %v1312_v29 = vshll.u32 %v672_v4, 8  ;;  %v682_v46 = vshrl.u32 %v943_v9, %v1285_v1  ;;  %v684_v38 = vshll.u32 %v943_v9, %v678_v24  ;;  %v687_v43 = vshll.u32 %v944_v11, %v678_v24 }
  0xd8   :  { %v695_v32 = vor.u32 %v694_v15, %v693_v35  ;;  %v407_v58 = vmul.u32 %v405_v40, %v403_v44  ;;  %v692_v6 = vor.u32 %v691_v53, %v690_v20  ;;  %vm264_vm3 = vc.u32 %v262_v12, %v258_v60 }
  0xd9   :  { %v278_v18 = vshll.u32 %v1170_v50, 16  ;;  %v681_v16 = vshll.u32 %v1618_v23, %v678_v24  ;;  %v1322_v13 = vor.u32 %v685_v31, %v684_v38  ;;  %v1324_v4 = vor.u32 %v688_v63, %v687_v43 }
  0xda   :  { %vm699_vm4 = vcmp.lt.s32.totalorder %v1299_v30, 4  ;;  %v428_v25 = vshrl.u32 %v397_v34, 16  ;;  %v1330_v11 = vand.u32 65535, %v1312_v29  ;;  %v1333_v53 = vshrl.u32 %v1312_v29, 16 }
  0xdb   :  { %v709_v9 = vsel %vm699_vm4, %v695_v32, 1326507024  ;;  %vm415_vm5 = vc.u32 %v407_v58, %v411_v57  ;;  %v1335_v60 = vor.u32 %v682_v46, %v681_v16  ;;  %v257_v12 = vshrl.u32 %v1136_v19, 16 }
  0xdc   :  { %v265_v24 = vsel %vm264_vm3, 1, %v936_v2  ;;  %v1339_v31 = vmul.u32 %v405_v40, %v404_v7  ;;  %vm696_vm6 = vcmp.lt.s32.totalorder %v1299_v30, 1  ;;  %vm698_vm7 = vcmp.lt.s32.totalorder %v1299_v30, 3 }
  0xdd   :  { %v705_v34 = vsel %vm699_vm4, %v692_v6, 920167782  ;;  %v410_v63 = vmul.u32 %v406_v41, %v404_v7  ;;  %v708_v16 = vsel %vm696_vm6, %v1322_v13, %v1324_v4  ;;  %v710_v19 = vsel %vm698_vm7, %v692_v6, %v709_v9 }
  0xde   :  { %vm282_vm8 = vc.u32 %v1168_v49, %v278_v18  ;;  %v416_v40 = vsel %vm415_vm5, 1, %v936_v2  ;;  %v429_v35 = vmul.u32 %v427_v47, %v403_v44  ;;  %v430_v15 = vmul.u32 %v428_v25, %v403_v44 }
  0xdf   :  { %v267_v20 = vadd.s32 %v265_v24, %v1242_v22  ;;  %v417_v46 = vadd.s32 %v411_v57, %v407_v58  ;;  %vm697_vm9 = vcmp.lt.s32.totalorder %v1299_v30, 2  ;;  %v704_v41 = vsel %vm696_vm6, %v1335_v60, %v1322_v13 }
  0xe0   :  { %v706_v38 = vsel %vm698_vm7, %v1324_v4, %v705_v34  ;;  %v413_v43 = vshll.u32 %v1339_v31, 16  ;;  %v431_v32 = vmul.u32 %v427_v47, %v404_v7  ;;  %v1365_v44 = vsel %vm697_vm9, %v708_v16, %v710_v19 }
  0xe1   :  { %v283_v22 = vsel %vm282_vm8, 1, %v936_v2  ;;  %v418_v57 = vadd.s32 %v416_v40, %v410_v63  ;;  %v280_v58 = vshll.u32 %v1176_v51, 16  ;;  %v284_v6 = vadd.s32 %v278_v18, %v1168_v49 }
  0xe2   :  { %v285_v9 = vadd.s32 %v283_v22, %v1188_v61  ;;  %v432_v24 = vmul.u32 %v428_v25, %v404_v7  ;;  %v1373_v34 = vsel %vm697_vm9, %v704_v41, %v706_v38  ;;  %v259_v47 = vshrl.u32 %v1163_v33, 16 }
  0xe3   :  { %v268_v45 = vadd.s32 %v267_v20, %v257_v12  ;;  %v715_v16 = vand.u32 65535, %v1365_v44  ;;  %v279_v19 = vshrl.u32 %v1170_v50, 16  ;;  %vm286_vm10 = vc.u32 %v284_v6, %v280_v58 }
  0xe4   :  { %vm419_vm11 = vc.u32 %v417_v46, %v413_v43  ;;  %v716_v63 = vshrl.u32 %v1365_v44, 16  ;;  %v287_v49 = vsel %vm286_vm10, 1, %v936_v2  ;;  %v433_v25 = vshll.u32 %v430_v15, 16 }
  0xe5   :  { %v420_v61 = vsel %vm419_vm11, 1, %v936_v2  ;;  %v738_v18 = vshrl.u32 %v1373_v34, 16  ;;  %v289_v40 = vadd.s32 %v287_v49, %v285_v9  ;;  %v1383_v12 = vadd.s32 %v268_v45, %v259_v47 }
  0xe6   :  { %v422_v33 = vadd.s32 %v420_v61, %v418_v57  ;;  %v281_v20 = vshrl.u32 %v1176_v51, 16  ;;  %v412_v50 = vshrl.u32 %v1283_v52, 16  ;;  %vm437_vm12 = vc.u32 %v429_v35, %v433_v25 }
  0xe7   :  { %v290_v46 = vadd.s32 %v289_v40, %v279_v19  ;;  %v435_v41 = vshll.u32 %v431_v32, 16  ;;  %v438_v38 = vsel %vm437_vm12, 1, %v936_v2  ;;  %v439_v43 = vadd.s32 %v433_v25, %v429_v35 }
  0xe8   :  { %v717_v22 = vmul.u32 %v715_v16, %v1330_v11  ;;  %v1389_v8 = vadd.s32 %v284_v6, %v280_v58  ;;  %v423_v23 = vadd.s32 %v422_v33, %v412_v50  ;;  %v440_v7 = vadd.s32 %v438_v38, %v432_v24 }
  0xe9   :  { %v1394_v45 = vmul.u32 %v716_v63, %v1330_v11  ;;  %v291_v51 = vadd.s32 %v290_v46, %v281_v20  ;;  %v414_v52 = vshrl.u32 %v1339_v31, 16  ;;  %vm441_vm13 = vc.u32 %v439_v43, %v435_v41 }
  0xea   :  { %vm294_vm14 = vc.u32 %v1383_v12, %v1389_v8  ;;  %v442_v35 = vsel %vm441_vm13, 1, %v936_v2  ;;  %vm574_vm15 = vc.u32 %v1287_v37, %v568_v59  ;;  %v588_v57 = vshll.u32 %v1264_v10, 16 }
  0xeb   :  { %v295_v58 = vadd.s32 1, %v291_v51  ;;  %v434_v6 = vshrl.u32 %v430_v15, 16  ;;  %v436_v9 = vshrl.u32 %v431_v32, 16  ;;  %v444_v24 = vadd.s32 %v442_v35, %v440_v7 }
  0xec   :  { %v1404_v47 = vadd.s32 %v423_v23, %v414_v52  ;;  %v1406_v19 = vadd.s32 %v439_v43, %v435_v41  ;;  %v567_v31 = vshrl.u32 %v1213_v28, 16  ;;  %v575_v49 = vsel %vm574_vm15, 1, %v936_v2 }
  0xed   :  { %v296_v61 = vsel %vm294_vm14, %v295_v58, %v291_v51  ;;  %v445_v25 = vadd.s32 %v444_v24, %v434_v6  ;;  %v577_v40 = vadd.s32 %v575_v49, %v1289_v39  ;;  %vm592_vm0 = vc.u32 %v1261_v3, %v588_v57 }
  0xee   :  { %v297_v59 = vadd.s32 %v296_v61, %v292_v5  ;;  %v590_v37 = vshll.u32 %v1273_v56, 16  ;;  %v593_v23 = vsel %vm592_vm0, 1, %v936_v2  ;;  %v594_v15 = vadd.s32 %v588_v57, %v1261_v3 }
  0xef   :  { %v721_v28 = vshll.u32 %v1394_v45, 16  ;;  %v446_v32 = vadd.s32 %v445_v25, %v436_v9  ;;  %v578_v7 = vadd.s32 %v577_v40, %v567_v31  ;;  %v595_v33 = vadd.s32 %v593_v23, %v1276_v0 }
  0xf0   :  { %v1421_v39 = vmul.u32 %v715_v16, %v1333_v53  ;;  %v298_v20 = vadd.s32 536870912, %v297_v59  ;;  %vm449_vm1 = vc.u32 %v1404_v47, %v1406_v19  ;;  %vm596_vm2 = vc.u32 %v594_v15, %v590_v37 }
  0xf1   :  { %v1428_v48 = vmul.u32 %v738_v18, %v1330_v11  ;;  %v450_v14 = vadd.s32 1, %v446_v32  ;;  %v569_v5 = vshrl.u32 %v1252_v55, 16  ;;  %v597_v3 = vsel %vm596_vm2, 1, %v936_v2 }
  0xf2   :  { %v447_v0 = vmul.u32 %v1237_v21, %v1296_v27  ;;  %v1434_v16 = vshrl.u32 %v298_v20, 30  ;;  %v589_v50 = vshrl.u32 %v1264_v10, 16  ;;  %v599_v46 = vadd.s32 %v597_v3, %v595_v33 }
  0xf3   :  { %vm725_vm3 = vc.u32 %v717_v22, %v721_v28  ;;  %v727_v41 = vadd.s32 %v721_v28, %v717_v22  ;;  %v451_v38 = vsel %vm449_vm1, %v450_v14, %v446_v32  ;;  %v1437_v43 = vadd.s32 %v578_v7, %v569_v5 }
  0xf4   :  { %v300_v51 = vshll.u32 %v1434_v16, 30  ;;  %v452_v52 = vadd.s32 %v451_v38, %v447_v0  ;;  %v591_v55 = vshrl.u32 %v1273_v56, 16  ;;  %v600_v35 = vadd.s32 %v599_v46, %v589_v50 }
  0xf5   :  { %v723_v57 = vshll.u32 %v1421_v39, 16  ;;  %v1619_v21 = vand.u32 65535, %v1373_v34  ;;  %v1445_v58 = vadd.s32 %v594_v15, %v590_v37  ;;  %v743_v10 = vshll.u32 %v1428_v48, 16 }
  0xf6   :  { %v726_v22 = vsel %vm725_vm3, 1, %v936_v2  ;;  %v301_v6 = vsub.s32 %v297_v59, %v300_v51  ;;  %v453_v9 = vadd.s32 536870912, %v452_v52  ;;  %v601_v24 = vadd.s32 %v600_v35, %v591_v55 }
  0xf7   :  { %v739_v27 = vmul.u32 %v1619_v21, %v1330_v11  ;;  %v720_v56 = vmul.u32 %v716_v63, %v1333_v53  ;;  %v1620_v31 = vmov %v1619_v21  ;;  %vm604_vm5 = vc.u32 %v1437_v43, %v1445_v58 }
  0xf8   :  { %v1455_v49 = vmul.u32 %v1620_v31, %v1333_v53  ;;  %vm729_vm8 = vc.u32 %v727_v41, %v723_v57  ;;  %vm302_vm10 = vcmp.lt.s32.totalorder %v301_v6, 0  ;;  %v303_v11 = vsub.s32 0, %v301_v6 }
  0xf9   :  { %v1459_v61 = vshrl.u32 %v453_v9, 30  ;;  %vm747_vm11 = vc.u32 %v739_v27, %v743_v10  ;;  %v728_v25 = vadd.s32 %v726_v22, %v720_v56  ;;  %v605_v40 = vadd.s32 1, %v601_v24 }
  0xfa   :  { %v304_v59 = vsel %vm302_vm10, %v303_v11, %v301_v6  ;;  %v730_v63 = vsel %vm729_vm8, 1, %v936_v2  ;;  %v749_v37 = vadd.s32 %v743_v10, %v739_v27  ;;  %v602_v23 = vmul.u32 %v1134_v17, %v1246_v26 }
  0xfb   :  { %v455_v44 = vshll.u32 %v1459_v61, 30  ;;  %v305_v15 = vclz %v304_v59  ;;  %v606_v28 = vsel %vm604_vm5, %v605_v40, %v601_v24  ;;  %v748_v32 = vsel %vm747_vm11, 1, %v936_v2 }
  0xfc   :  { %v742_v7 = vmul.u32 %v738_v18, %v1333_v53  ;;  %v745_v20 = vshll.u32 %v1455_v49, 16  ;;  %v1621_v14 = vmov 683565275   ;;  %v607_v0 = vadd.s32 %v606_v28, %v602_v23 }
  0xfd   :  { %v456_v33 = vsub.s32 %v452_v52, %v455_v44  ;;  %v680_v5 = vshrl.u32 %v1621_v14, %v1285_v1  ;;  %v850_v3 = vadd.s32 4294967294, %v305_v15  ;;  %v732_v50 = vadd.s32 %v730_v63, %v728_v25 }
  0xfe   :  { %v750_v17 = vadd.s32 %v748_v32, %v742_v7  ;;  %vm751_vm13 = vc.u32 %v749_v37, %v745_v20  ;;  %v701_v53 = vsel %vm699_vm4, %v1324_v4, 2102212464  ;;  %v608_v34 = vadd.s32 536870912, %v607_v0 }
  0xff   :  { %vm457_vm12 = vcmp.lt.s32.totalorder %v456_v33, 0  ;;  %v458_v46 = vsub.s32 0, %v456_v33  ;;  %v700_v26 = vsel %vm696_vm6, %v680_v5, %v1335_v60  ;;  %vm851_vm14 = vcmp.lt.s32.totalorder %v850_v3, 0 }
 0x100   :  { %v308_v18 = vsel %vm851_vm14, 0, %v850_v3  ;;  %v722_v1 = vshrl.u32 %v1394_v45, 16  ;;  %v752_v38 = vsel %vm751_vm13, 1, %v936_v2  ;;  %v293_v51 = vadd.s32 %v1389_v8, %v1383_v12 }
 0x101   :  { %v459_v41 = vsel %vm457_vm12, %v458_v46, %v456_v33  ;;  %v309_v52 = vsub.s32 32, %v308_v18  ;;  %v313_v55 = vsub.s32 4294967266, %v308_v18  ;;  %v702_v60 = vsel %vm698_vm7, %v1322_v13, %v701_v53 }
 0x102   :  { %v460_v35 = vclz %v459_v41  ;;  %v1485_v57 = vshrl.u32 %v608_v34, 30  ;;  %v733_v4 = vadd.s32 %v732_v50, %v722_v1  ;;  %v754_v21 = vadd.s32 %v752_v38, %v750_v17 }
 0x103   :  { %vm201_vm4 = vcmp.lt.s32.totalorder %v1049_v54, 0  ;;  %v310_v27 = vshll.u32 %v301_v6, %v308_v18  ;;  %v311_v45 = vshrl.u32 %v293_v51, %v309_v52  ;;  %v314_v10 = vadd.s32 127, %v313_v55 }
 0x104   :  { %v853_v2 = vadd.s32 4294967294, %v460_v35  ;;  %v448_v8 = vadd.s32 %v1406_v19, %v1404_v47  ;;  %v610_v12 = vshll.u32 %v1485_v57, 30  ;;  %v724_v22 = vshrl.u32 %v1421_v39, 16 }
 0x105   :  { %v744_v9 = vshrl.u32 %v1428_v48, 16  ;;  %v312_v13 = vor.u32 %v311_v45, %v310_v27  ;;  %v315_v24 = vshll.u32 %v314_v10, 23  ;;  %v323_v56 = vsub.s32 4, %v1434_v16 }
 0x106   :  { %vm854_vm6 = vcmp.lt.s32.totalorder %v853_v2, 0  ;;  %v611_v11 = vsub.s32 %v607_v0, %v610_v12  ;;  %v1494_v6 = vadd.s32 %v733_v4, %v724_v22  ;;  %v746_v47 = vshrl.u32 %v1455_v49, 16 }
 0x107   :  { %v463_v31 = vsel %vm854_vm6, 0, %v853_v2  ;;  %v755_v25 = vadd.s32 %v754_v21, %v744_v9  ;;  %v316_v40 = vor.u32 4788187, %v315_v24  ;;  %v1497_v19 = vadd.s32 %v749_v37, %v745_v20 }
 0x108   :  { %v464_v59 = vsub.s32 32, %v463_v31  ;;  %v319_v44 = vcvt.s32.f32 %v312_v13  ;;  %v468_v39 = vsub.s32 4294967266, %v463_v31  ;;  %vm612_vm7 = vcmp.lt.s32.totalorder %v611_v11, 0 }
 0x109   :  { %v613_v48 = vsub.s32 0, %v611_v11  ;;  %v317_v63 = vand.u32 2147483647, %v316_v40  ;;  %v465_v23 = vshll.u32 %v456_v33, %v463_v31  ;;  %v756_v28 = vadd.s32 %v755_v25, %v746_v47 }
 0x10a   :  { %v466_v15 = vshrl.u32 %v448_v8, %v464_v59  ;;  %v703_v32 = vsel %vm697_vm9, %v700_v26, %v702_v60  ;;  %v469_v7 = vadd.s32 127, %v468_v39  ;;  %vm759_vm15 = vc.u32 %v1494_v6, %v1497_v19 }
 0x10b   :  { %v614_v14 = vsel %vm612_vm7, %v613_v48, %v611_v11  ;;  %v320_v5 = vmul.f32 %v319_v44, %v317_v63  ;;  %v760_v20 = vadd.s32 1, %v756_v28  ;;  %vm356_vm0 = vcmp.lt.s32.totalorder %v1091_v42, 0 }
 0x10c   :  { %v467_v49 = vor.u32 %v466_v15, %v465_v23  ;;  %v615_v37 = vclz %v614_v14  ;;  %v1622_v3 = vand.u32 2147483647, %v1049_v54  ;;  %v324_v30 = vsel %vm201_vm4, %v323_v56, %v1434_v16 }
 0x10d   :  { %v470_v0 = vshll.u32 %v469_v7, 23  ;;  %v321_v50 = vxor.u32 2147483648, %v320_v5  ;;  %v478_v46 = vsub.s32 4, %v1459_v61  ;;  %v761_v26 = vsel %vm759_vm15, %v760_v20, %v756_v28 }
 0x10e   :  { %vm1506_vm1 = vcmp.le.f32.partialorder %v1622_v3, 0.7853982  ;;  %v856_v17 = vadd.s32 4294967294, %v615_v37  ;;  %v757_v53 = vmul.u32 %v1312_v29, %v703_v32  ;;  %v1625_v34 = vand.u32 2147483647, %v1091_v42 }
 0x10f   :  { %v471_v41 = vor.u32 4788187, %v470_v0  ;;  %v603_v1 = vadd.s32 %v1445_v58, %v1437_v43  ;;  %v322_v16 = vsel %vm201_vm4, %v321_v50, %v320_v5  ;;  %v326_v38 = vsel %vm1506_vm1, 0, %v324_v30 }
 0x110   :  { %vm1517_vm9 = vcmp.le.f32.partialorder %v1625_v34, 0.7853982  ;;  %v474_v51 = vcvt.s32.f32 %v467_v49  ;;  %vm857_vm2 = vcmp.lt.s32.totalorder %v856_v17, 0  ;;  %v1530_v29 = vsel %vm1506_vm1, %v1049_v54, %v322_v16 }
 0x111   :  { %v472_v52 = vand.u32 2147483647, %v471_v41  ;;  %v618_v55 = vsel %vm857_vm2, 0, %v856_v17  ;;  %v762_v35 = vadd.s32 %v761_v26, %v757_v53  ;;  %v327_v60 = vmul.f32 %v1530_v29, %v1530_v29 }
 0x112   :  { %v479_v43 = vsel %vm356_vm0, %v478_v46, %v1459_v61  ;;  %v619_v58 = vsub.s32 32, %v618_v55  ;;  %v623_v4 = vsub.s32 4294967266, %v618_v55  ;;  %v343_v21 = vadd.s32 3, %v326_v38 }
 0x113   :  { %v475_v27 = vmul.f32 %v474_v51, %v472_v52  ;;  %v620_v45 = vshll.u32 %v611_v11, %v618_v55  ;;  %v763_v10 = vadd.s32 536870912, %v762_v35  ;;  %v328_v2 = vmul.f32 -0.001358992, %v327_v60 }
 0x114   :  { %v335_v8 = vmul.f32 -0.00019511016, %v327_v60  ;;  %v621_v12 = vshrl.u32 %v603_v1, %v619_v58  ;;  %v624_v22 = vadd.s32 127, %v623_v4  ;;  %v481_v13 = vsel %vm1517_vm9, 0, %v479_v43  ;;  %v101_v58 = vpop.permute.xlu2 %100 }
 0x115   :  { %v476_v9 = vxor.u32 2147483648, %v475_v27  ;;  %v1539_v24 = vshrl.u32 %v763_v10, 30  ;;  %v329_v56 = vadd.f32 0.041655596, %v328_v2  ;;  %vm511_vm3 = vcmp.lt.s32.totalorder %v1055_v62, 0 }
 0x116   :  { %v336_v31 = vadd.f32 0.008332121, %v335_v8  ;;  %v622_v25 = vor.u32 %v621_v12, %v620_v45  ;;  %v625_v61 = vshll.u32 %v624_v22, 23  ;;  %v344_v40 = vand.u32 3, %v343_v21  ;;  %v145_v1 = vpop.f32.mrf.mxu0 }
 0x117   :  { %v477_v11 = vsel %vm356_vm0, %v476_v9, %v475_v27  ;;  %v765_v59 = vshll.u32 %v1539_v24, 30  ;;  %v330_v47 = vmul.f32 %v329_v56, %v327_v60  ;;  %v498_v23 = vadd.s32 3, %v481_v13 }
 0x118   :  { %v337_v44 = vmul.f32 %v336_v31, %v327_v60  ;;  %v1548_v39 = vsel %vm1517_vm9, %v1091_v42, %v477_v11  ;;  %v626_v48 = vor.u32 4788187, %v625_v61  ;;  %v1628_v15 = vand.u32 2147483647, %v1055_v62 }
 0x119   :  { %v482_v63 = vmul.f32 %v1548_v39, %v1548_v39  ;;  %v1558_v32 = vsub.s32 %v762_v35, %v765_v59  ;;  %v331_v7 = vadd.f32 -0.4999988, %v330_v47  ;;  %v629_v49 = vcvt.s32.f32 %v622_v25 }
 0x11a   :  { %vm1554_vm5 = vcmp.le.f32.partialorder %v1628_v15, 0.7853982  ;;  %v338_v14 = vadd.f32 -0.16666654, %v337_v44  ;;  %v627_v5 = vand.u32 2147483647, %v626_v48  ;;  %vm342_vm13 = vweird.f32 %v1049_v54  ;;  %v105_v48 = vpop.permute.xlu0 %104 }
 0x11b   :  { %vm346_vm8 = vcmp.eq.s32.totalorder %v344_v40, 0  ;;  %v483_v37 = vmul.f32 -0.001358992, %v482_v63  ;;  %v490_v20 = vmul.f32 -0.00019511016, %v482_v63  ;;  %vm767_vm10 = vcmp.lt.s32.totalorder %v1558_v32, 0 }
 0x11c   :  { %v768_v3 = vsub.s32 0, %v1558_v32  ;;  %v332_v33 = vmul.f32 %v331_v7, %v327_v60  ;;  %v339_v30 = vmul.f32 %v338_v14, %v327_v60  ;;  %vm345_vm11 = vcmp.lt.s32.totalorder %v344_v40, 2 }
 0x11d   :  { %vm349_vm12 = vcmp.eq.s32.totalorder %v344_v40, 2  ;;  %v630_v0 = vmul.f32 %v629_v49, %v627_v5  ;;  %v484_v50 = vadd.f32 0.041655596, %v483_v37  ;;  %v491_v46 = vadd.f32 0.008332121, %v490_v20 }
 0x11e   :  { %v633_v17 = vsub.s32 4, %v1485_v57  ;;  %v769_v26 = vsel %vm767_vm10, %v768_v3, %v1558_v32  ;;  %v333_v53 = vadd.f32 1.0, %v332_v33  ;;  %v340_v34 = vadd.f32 1.0, %v339_v30 }
 0x11f   :  { %v631_v18 = vxor.u32 2147483648, %v630_v0  ;;  %v770_v41 = vclz %v769_v26  ;;  %v485_v16 = vmul.f32 %v484_v50, %v482_v63  ;;  %v492_v38 = vmul.f32 %v491_v46, %v482_v63 }
 0x120   :  { %v499_v51 = vand.u32 3, %v498_v23  ;;  %v758_v52 = vadd.s32 %v1497_v19, %v1494_v6  ;;  %v341_v55 = vmul.f32 %v340_v34, %v1530_v29  ;;  %v350_v35 = vxor.u32 2147483648, %v333_v53  ;;  %v148_v23 = vpop.f32.mrf.mxu1 }
 0x121   :  { %v632_v60 = vsel %vm511_vm3, %v631_v18, %v630_v0  ;;  %v859_v43 = vadd.s32 4294967294, %v770_v41  ;;  %v486_v4 = vadd.f32 -0.4999988, %v485_v16  ;;  %v493_v21 = vadd.f32 -0.16666654, %v492_v38 }
 0x122   :  { %v634_v27 = vsel %vm511_vm3, %v633_v17, %v1485_v57  ;;  %v635_v45 = vsel %vm1554_vm5, %v1055_v62, %v632_v60  ;;  %v146_v10 = vadd.f32 %v145_v1, %v101_v58  ;;  %v347_v6 = vxor.u32 2147483648, %v341_v55 }
 0x123   :  { %v637_v19 = vmul.f32 %v635_v45, %v635_v45  ;;  %vm860_vm14 = vcmp.lt.s32.totalorder %v859_v43, 0  ;;  %v351_v29 = vsel %vm349_vm12, %v350_v35, %v341_v55  ;;  %v487_v2 = vmul.f32 %v486_v4, %v482_v63  ;;  %v151_v55 = vpop.f32.mrf.mxu2 }
 0x124   :  { %v494_v8 = vmul.f32 %v493_v21, %v482_v63  ;;  %v773_v12 = vsel %vm860_vm14, 0, %v859_v43  ;;  %v348_v22 = vsel %vm346_vm8, %v333_v53, %v347_v6  ;;  %v636_v61 = vsel %vm1554_vm5, 0, %v634_v27 }
 0x125   :  { %v638_v9 = vmul.f32 -0.001358992, %v637_v19  ;;  %v645_v13 = vmul.f32 -0.00019511016, %v637_v19  ;;  %v774_v56 = vsub.s32 32, %v773_v12  ;;  %v352_v57 = vsel %vm345_vm11, %v348_v22, %v351_v29 }
 0x126   :  { %v488_v31 = vadd.f32 1.0, %v487_v2  ;;  %v495_v25 = vadd.f32 1.0, %v494_v8  ;;  %v353_v11 = vsel %vm342_vm13, nan, %v352_v57  ;;  %v778_v14 = vsub.s32 4294967266, %v773_v12 }
 0x127   :  { %v639_v59 = vadd.f32 0.041655596, %v638_v9  ;;  %v646_v47 = vadd.f32 0.008332121, %v645_v13  ;;  %v776_v44 = vshrl.u32 %v758_v52, %v774_v56  ;;  %v819_v63 = vadd.f32 %v353_v11, %v146_v10  ;;  %v109_v52 = vpop.permute.xlu1 %108 }
 0x128   :  { %v496_v15 = vmul.f32 %v495_v25, %v1548_v39  ;;  %v505_v7 = vxor.u32 2147483648, %v488_v31  ;;  %vm500_vm4 = vcmp.lt.s32.totalorder %v499_v51, 2  ;;  %vm501_vm6 = vcmp.eq.s32.totalorder %v499_v51, 0 }
 0x129   :  { %v640_v40 = vmul.f32 %v639_v59, %v637_v19  ;;  %v647_v5 = vmul.f32 %v646_v47, %v637_v19  ;;  %823 = vst [vmem:[#allocation2] sm:$0xff] %v819_v63  ;;  %vm504_vm7 = vcmp.eq.s32.totalorder %v499_v51, 2  ;;  %v775_v54 = vshll.u32 %v1558_v32, %v773_v12 }
 0x12a   :  { %v502_v28 = vxor.u32 2147483648, %v496_v15  ;;  %v779_v49 = vadd.s32 127, %v778_v14  ;;  %v149_v37 = vadd.f32 %v148_v23, %v105_v48  ;;  %v653_v33 = vadd.s32 3, %v636_v61 }
 0x12b   :  { %v641_v20 = vadd.f32 -0.4999988, %v640_v40  ;;  %v648_v3 = vadd.f32 -0.16666654, %v647_v5  ;;  %v506_v0 = vsel %vm504_vm7, %v505_v7, %v496_v15  ;;  %v777_v50 = vor.u32 %v776_v44, %v775_v54  ;;  %v154_v15 = vpop.f32.mrf.mxu3  ;;  %v113_v40 = vpop.permute.xlu2 %112 }
 0x12c   :  { %v503_v30 = vsel %vm501_vm6, %v488_v31, %v502_v28  ;;  %v780_v39 = vshll.u32 %v779_v49, 23  ;;  %vm497_vm15 = vweird.f32 %v1091_v42  ;;  %v654_v1 = vand.u32 3, %v653_v33 }
 0x12d   :  { %v507_v46 = vsel %vm500_vm4, %v503_v30, %v506_v0  ;;  %v642_v17 = vmul.f32 %v641_v20, %v637_v19  ;;  %v649_v26 = vmul.f32 %v648_v3, %v637_v19  ;;  %v784_v38 = vcvt.s32.f32 %v777_v50 }
 0x12e   :  { %v508_v53 = vsel %vm497_vm15, nan, %v507_v46  ;;  %v781_v34 = vor.u32 4788187, %v780_v39  ;;  %v152_v42 = vadd.f32 %v151_v55, %v109_v52  ;;  %vm656_vm0 = vcmp.eq.s32.totalorder %v654_v1, 0 }
 0x12f   :  { %v820_v18 = vadd.f32 %v508_v53, %v149_v37  ;;  %v643_v41 = vadd.f32 1.0, %v642_v17  ;;  %v650_v32 = vadd.f32 1.0, %v649_v26  ;;  %vm659_vm1 = vcmp.eq.s32.totalorder %v654_v1, 2 }
 0x130   :  { %v782_v16 = vand.u32 2147483647, %v781_v34  ;;  %vm666_vm9 = vcmp.lt.s32.totalorder %v1155_v36, 0  ;;  %vm655_vm2 = vcmp.lt.s32.totalorder %v654_v1, 2  ;;  %vm652_vm3 = vweird.f32 %v1055_v62 }
 0x131   :  { %824 = vst [vmem:[#allocation2 + $0x8] sm:$0xff] %v820_v18  ;;  %v651_v35 = vmul.f32 %v650_v32, %v635_v45  ;;  %v660_v60 = vxor.u32 2147483648, %v643_v41  ;;  %v1631_v10 = vand.u32 2147483647, %v1155_v36  ;;  %v788_v29 = vsub.s32 4, %v1539_v24 }
 0x132   :  { %v785_v43 = vmul.f32 %v784_v38, %v782_v16  ;;  %v155_v5 = vadd.f32 %v154_v15, %v113_v40  ;;  %vm807_vm12 = vweird.f32 %v1155_v36 }
 0x133   :  { %v657_v58 = vxor.u32 2147483648, %v651_v35  ;;  %v661_v21 = vsel %vm659_vm1, %v660_v60, %v651_v35  ;;  %vm1591_vm5 = vcmp.le.f32.partialorder %v1631_v10, 0.7853982  ;;  %v789_v9 = vsel %vm666_vm9, %v788_v29, %v1539_v24 }
 0x134   :  { %v786_v51 = vxor.u32 2147483648, %v785_v43  ;;  %v791_v57 = vsel %vm1591_vm5, 0, %v789_v9 }
 0x135   :  { %v658_v4 = vsel %vm656_vm0, %v643_v41, %v657_v58  ;;  %v808_v59 = vadd.s32 3, %v791_v57 }
 0x136   :  { %v662_v27 = vsel %vm655_vm2, %v658_v4, %v661_v21  ;;  %v787_v45 = vsel %vm666_vm9, %v786_v51, %v785_v43 }
 0x137   :  { %v663_v19 = vsel %vm652_vm3, nan, %v662_v27  ;;  %v790_v2 = vsel %vm1591_vm5, %v1155_v36, %v787_v45  ;;  %v809_v23 = vand.u32 3, %v808_v59 }
 0x138   :  { %v821_v8 = vadd.f32 %v663_v19, %v152_v42  ;;  %v792_v12 = vmul.f32 %v790_v2, %v790_v2 }
 0x139   :  { %vm811_vm8 = vcmp.eq.s32.totalorder %v809_v23, 0  ;;  %vm814_vm10 = vcmp.eq.s32.totalorder %v809_v23, 2  ;;  %vm810_vm11 = vcmp.lt.s32.totalorder %v809_v23, 2 }
 0x13a   :  { %825 = vst [vmem:[#allocation2 + $0x10] sm:$0xff] %v821_v8  ;;  %v793_v62 = vmul.f32 -0.001358992, %v792_v12  ;;  %v800_v22 = vmul.f32 -0.00019511016, %v792_v12 }
 0x13c   :  { %v794_v13 = vadd.f32 0.041655596, %v793_v62  ;;  %v801_v56 = vadd.f32 0.008332121, %v800_v22 }
 0x13e   :  { %v795_v31 = vmul.f32 %v794_v13, %v792_v12  ;;  %v802_v25 = vmul.f32 %v801_v56, %v792_v12 }
 0x140   :  { %v796_v61 = vadd.f32 -0.4999988, %v795_v31  ;;  %v803_v11 = vadd.f32 -0.16666654, %v802_v25 }
 0x142   :  { %v797_v47 = vmul.f32 %v796_v61, %v792_v12  ;;  %v804_v44 = vmul.f32 %v803_v11, %v792_v12 }
 0x144   :  { %v798_v48 = vadd.f32 1.0, %v797_v47  ;;  %v805_v63 = vadd.f32 1.0, %v804_v44 }
 0x146   :  { %v806_v7 = vmul.f32 %v805_v63, %v790_v2  ;;  %v815_v14 = vxor.u32 2147483648, %v798_v48 }
 0x148   :  { %v812_v24 = vxor.u32 2147483648, %v806_v7  ;;  %v816_v54 = vsel %vm814_vm10, %v815_v14, %v806_v7 }
 0x14a   :  { %v813_v28 = vsel %vm811_vm8, %v798_v48, %v812_v24 }
 0x14b   :  { %v817_v49 = vsel %vm810_vm11, %v813_v28, %v816_v54 }
 0x14c   :  { %v818_v37 = vsel %vm807_vm12, nan, %v817_v49 }
 0x14d   :  { %v822_v20 = vadd.f32 %v818_v37, %v155_v5 }
 0x14f   :  { %826 = vst [vmem:[#allocation2 + $0x18] sm:$0xff] %v822_v20 }
 0x150   :  { %839 = dma.vmem_to_hbm [thread:$0]  %s832_s5, 512, %s834_s8, [#allocation3], %s949_s9, %s949_s9, %s950_s10  }
 0x151   :  { %934 = dma.done.wait [#allocation3], 512  }
 0x152   :  { %935 = vsyncadd [#allocation3], 4294966784 }
 0x153   :  { %844 = vsyncpa [#allocation3], 1 }

</bundles_post_ra>
